<compile_context>
chip_gen: v6e
topology: v6e:2x2x1
jax: 0.10.0
libtpu: 0.0.40
codegen_flags: <defaults>
</compile_context>

<pallas_src>
import functools
from math import exp

import jax
import jax.numpy as jnp
import numpy as np
from jax.experimental import pallas as pl
from jax.experimental.pallas import tpu as pltpu

_C1 = 0.01 ** 2
_C2 = 0.03 ** 2


def _gaussian_1d(window_size, sigma):
    g = np.array(
        [exp(-(x - window_size // 2) ** 2 / float(2 * sigma ** 2))
         for x in range(window_size)],
        dtype=np.float64,
    )
    return g / g.sum()


def _band_matrix(n, g):
    """band[a, b] = g[b - a + half]; zero-padded 'same' 1-D conv as a matmul."""
    ws = len(g)
    half = ws // 2
    m = np.zeros((n, n), dtype=np.float32)
    for a in range(n):
        for b in range(max(0, a - half), min(n, a + half + 1)):
            m[a, b] = g[b - a + half]
    return m


def _block_diag(block, k):
    n = block.shape[0]
    out = np.zeros((k * n, k * n), dtype=np.float32)
    for i in range(k):
        out[i * n:(i + 1) * n, i * n:(i + 1) * n] = block
    return out


def _split_hi_lo(a_f32):
    """f32 -> (bf16 hi, bf16 lo) so hi+lo reproduces a_f32 to ~2^-17."""
    hi = a_f32.astype(jnp.bfloat16)
    lo = (a_f32 - hi.astype(jnp.float32)).astype(jnp.bfloat16)
    return hi, lo


def _ssim_kernel(mh_hi_ref, mh_lo_ref, aw_hi_ref, aw_lo_ref, x_ref, y_ref,
                 loss_ref, acc_ref, *, tbc, hp, wp, pad_px, inv_n):
    step = pl.program_id(0)

    @pl.when(step == 0)
    def _():
        acc_ref[...] = jnp.zeros_like(acc_ref)

    nb = 5 * tbc
    x = x_ref[...].astype(jnp.float32)   # (tbc, hp, wp) super-planes
    y = y_ref[...].astype(jnp.float32)

    # Stack the 5 conv operands on the leading dim and flatten: the W-side
    # conv becomes one lane-dense matmul with M = 5*tbc*hp.
    ops = jnp.concatenate([x, y, x * x, y * y, x * y], axis=0)  # (nb, hp, wp)
    ops2 = ops.reshape(nb * hp, wp)

    # bf16_3x (== Precision.HIGH accuracy) instead of HIGHEST's 6-pass f32
    # emulation: C ~= A_hi@B_hi + A_lo@B_hi + A_hi@B_lo, f32 accumulation.
    o_hi, o_lo = _split_hi_lo(ops2)
    aw_hi = aw_hi_ref[...]
    aw_lo = aw_lo_ref[...]
    zw = (jnp.dot(o_hi, aw_hi, preferred_element_type=jnp.float32)
          + jnp.dot(o_lo, aw_hi, preferred_element_type=jnp.float32)
          + jnp.dot(o_hi, aw_lo, preferred_element_type=jnp.float32))
    zw = zw.reshape(nb, hp, wp)

    # H-side conv, batched over all 5*tbc super-planes as a standard batched
    # matmul (MH broadcast along the batch dim).
    z_hi, z_lo = _split_hi_lo(zw)
    mh_hi = jnp.broadcast_to(mh_hi_ref[...], (nb, hp, hp))
    mh_lo = jnp.broadcast_to(mh_lo_ref[...], (nb, hp, hp))
    conv = (jnp.einsum('bij,bjk->bik', mh_hi, z_hi,
                       preferred_element_type=jnp.float32)
            + jnp.einsum('bij,bjk->bik', mh_hi, z_lo,
                         preferred_element_type=jnp.float32)
            + jnp.einsum('bij,bjk->bik', mh_lo, z_hi,
                         preferred_element_type=jnp.float32))

    mu1 = conv[0:tbc]
    mu2 = conv[tbc:2 * tbc]
    s11 = conv[2 * tbc:3 * tbc]
    s22 = conv[3 * tbc:4 * tbc]
    s12 = conv[4 * tbc:5 * tbc]

    mu1_sq = mu1 * mu1
    mu2_sq = mu2 * mu2
    mu12 = mu1 * mu2
    sigma1_sq = s11 - mu1_sq
    sigma2_sq = s22 - mu2_sq
    sigma12 = s12 - mu12
    num = (2.0 * mu12 + _C1) * (2.0 * sigma12 + _C2)
    den = (mu1_sq + mu2_sq + _C1) * (sigma1_sq + sigma2_sq + _C2)

    # EUP reciprocal (free slot) + one Newton step instead of a VPU divide.
    inv = pl.reciprocal(den, approx=True)
    inv = inv * (2.0 - den * inv)
    acc_ref[...] += jnp.sum(num * inv, axis=0)   # accumulate SSIM map (VPU)

    @pl.when(step == pl.num_programs(0) - 1)
    def _():
        total = jnp.sum(acc_ref[...])
        # Padded (all-zero) planes contribute exactly 1 per pixel; subtract.
        loss_ref[0, 0] = 1.0 - (total - pad_px) * inv_n


def ssim_loss(img1, img2, window_size=11, sigma=1.5, max_block_elems=256 * 1024):
    """Pallas SSIM_Loss.forward: 1 - mean(SSIM map), size_average=True."""
    assert img1.shape == img2.shape and img1.ndim == 4
    b, c, h, w = img1.shape
    n = b * c

    # ---- pack planes into lane/sublane-dense "super-planes" -----------------
    kw = min(max(1, 128 // w), n) if w < 128 else 1          # lane packing
    kh = min(max(1, 128 // h), max(1, -(-n // kw))) if h < 128 else 1
    hp, wp = kh * h, kw * w
    gpp = kh * kw                                            # planes / group
    g = -(-n // gpp)                                         # super-planes

    # block size: as many super-planes per grid step as a ~1 MiB (f32) budget
    # allows, to amortize the ~0.35us/step pipeline overhead.  (Raise the
    # budget on v5e/v6e's 128 MiB VMEM; keep modest on v7x's 64 MiB.)
    tbc = max(1, min(g, max_block_elems // (hp * wp)))
    n_blocks = -(-g // tbc)
    g_pad = n_blocks * tbc
    n_slots = g_pad * gpp

    pad_px = float(g_pad * hp * wp - n * h * w)
    inv_n = 1.0 / float(n * h * w)

    def pack(im):
        p = im.reshape(n, h, w)
        if n_slots > n:
            p = jnp.concatenate(
                [p, jnp.zeros((n_slots - n, h, w), im.dtype)], axis=0)
        p = p.reshape(g_pad, kh, kw, h, w)
        p = p.transpose(0, 1, 3, 2, 4)           # (g_pad, kh, h, kw, w)
        return p.reshape(g_pad, hp, wp)

    x = pack(img1)
    y = pack(img2)

    # ---- banded (block-diagonal) conv weights, bf16 hi/lo split -------------
    g1d = _gaussian_1d(window_size, sigma)
    mh = jnp.asarray(_block_diag(_band_matrix(h, g1d), kh))      # conv along H
    aw = jnp.asarray(_block_diag(_band_matrix(w, g1d).T, kw))    # conv along W
    mh_hi, mh_lo = _split_hi_lo(mh)
    aw_hi, aw_lo = _split_hi_lo(aw)

    kernel = functools.partial(
        _ssim_kernel, tbc=tbc, hp=hp, wp=wp, pad_px=pad_px, inv_n=inv_n)

    loss = pl.pallas_call(
        kernel,
        out_shape=jax.ShapeDtypeStruct((1, 1), jnp.float32),
        grid_spec=pltpu.PrefetchScalarGridSpec(
            num_scalar_prefetch=0,
            grid=(n_blocks,),
            in_specs=[
                pl.BlockSpec((hp, hp), lambda p: (0, 0)),          # MH hi
                pl.BlockSpec((hp, hp), lambda p: (0, 0)),          # MH lo
                pl.BlockSpec((wp, wp), lambda p: (0, 0)),          # AW hi
                pl.BlockSpec((wp, wp), lambda p: (0, 0)),          # AW lo
                pl.BlockSpec((tbc, hp, wp), lambda p: (p, 0, 0)),  # img1 planes
                pl.BlockSpec((tbc, hp, wp), lambda p: (p, 0, 0)),  # img2 planes
            ],
            out_specs=pl.BlockSpec(memory_space=pltpu.MemorySpace.SMEM),
            scratch_shapes=[pltpu.VMEM((hp, wp), jnp.float32)],
        ),
        compiler_params=pltpu.CompilerParams(
            dimension_semantics=("arbitrary",),     # sequential accumulation
            vmem_limit_bytes=48 * 1024 * 1024,
        ),
    )(mh_hi, mh_lo, aw_hi, aw_lo, x, y)
    return loss[0, 0]


def ssim_loss_ref(img1, img2, window_size=11, sigma=1.5):
    """Pure-JAX reference mirroring the PyTorch SSIM_Loss module."""
    _, c, _, _ = img1.shape
    g = jnp.asarray(_gaussian_1d(window_size, sigma), jnp.float32)
    w2d = jnp.outer(g, g)
    kernel = jnp.broadcast_to(
        w2d, (c, 1, window_size, window_size)).astype(jnp.float32)
    pad = window_size // 2

    def conv(t):
        return jax.lax.conv_general_dilated(
            t.astype(jnp.float32), kernel, window_strides=(1, 1),
            padding=[(pad, pad), (pad, pad)],
            dimension_numbers=("NCHW", "OIHW", "NCHW"),
            feature_group_count=c,
            precision=jax.lax.Precision.HIGHEST)

    mu1 = conv(img1)
    mu2 = conv(img2)
    mu1_sq = mu1 * mu1
    mu2_sq = mu2 * mu2
    mu12 = mu1 * mu2
    sigma1_sq = conv(img1 * img1) - mu1_sq
    sigma2_sq = conv(img2 * img2) - mu2_sq
    sigma12 = conv(img1 * img2) - mu12
    ssim_map = ((2 * mu12 + _C1) * (2 * sigma12 + _C2)) / (
        (mu1_sq + mu2_sq + _C1) * (sigma1_sq + sigma2_sq + _C2))
    return 1.0 - jnp.mean(ssim_map)


if __name__ == "__main__":
    key = jax.random.PRNGKey(0)
    k1, k2 = jax.random.split(key)
    # NCHW inputs, small shape consistent with the module: batch=2, channels=4, 16x16.
    shape = (2, 4, 16, 16)
    img1 = jax.random.normal(k1, shape, dtype=jnp.float32)
    img2 = 0.7 * img1 + 0.3 * jax.random.normal(k2, shape, dtype=jnp.float32)

    loss = ssim_loss(img1, img2)
    loss = jax.block_until_ready(loss)

    ref = ssim_loss_ref(img1, img2)
    np.testing.assert_allclose(np.asarray(loss), np.asarray(ref),
                               rtol=1e-3, atol=1e-4)

    print("KERNEL_OK")
</pallas_src>

<mosaic_0001>
module attributes {stable_mosaic.version = 11 : i64} {
  func.func @_ssim_kernel(%arg0: i32, %arg1: memref<16x16xbf16, #tpu.memory_space<vmem>>, %arg2: memref<16x16xbf16, #tpu.memory_space<vmem>>, %arg3: memref<128x128xbf16, #tpu.memory_space<vmem>>, %arg4: memref<128x128xbf16, #tpu.memory_space<vmem>>, %arg5: memref<1x16x128xf32, #tpu.memory_space<vmem>>, %arg6: memref<1x16x128xf32, #tpu.memory_space<vmem>>, %arg7: memref<1x1xf32, #tpu.memory_space<smem>>, %arg8: memref<16x128xf32, #tpu.memory_space<vmem>>) attributes {dimension_semantics = [#tpu.dimension_semantics<arbitrary>], iteration_bounds = array<i64: 1>, scalar_prefetch = 0 : i64, scratch_operands = 1 : i64, tpu.core_type = #tpu.core_type<tc>, window_params = [{pipeline_mode = #tpu.pipeline_mode<synchronous>, transform_indices = @transform_0, window_bounds = array<i64: 16, 16>}, {pipeline_mode = #tpu.pipeline_mode<synchronous>, transform_indices = @transform_1, window_bounds = array<i64: 16, 16>}, {pipeline_mode = #tpu.pipeline_mode<synchronous>, transform_indices = @transform_2, window_bounds = array<i64: 128, 128>}, {pipeline_mode = #tpu.pipeline_mode<synchronous>, transform_indices = @transform_3, window_bounds = array<i64: 128, 128>}, {transform_indices = @transform_4, window_bounds = array<i64: 1, 16, 128>}, {transform_indices = @transform_5, window_bounds = array<i64: 1, 16, 128>}, {transform_indices = @transform_6, window_bounds = array<i64: 1, 1>}]} {
    %c0_i32 = arith.constant 0 : i32
    %0 = arith.cmpi eq, %arg0, %c0_i32 : i32
    %1 = arith.extui %0 : i1 to i32
    %c0_i32_0 = arith.constant 0 : i32
    %2 = arith.cmpi ne, %1, %c0_i32_0 : i32
    scf.if %2 {
      %cst_33 = arith.constant 0.000000e+00 : f32
      %77 = vector.broadcast %cst_33 : f32 to vector<16x128xf32>
      %c0_34 = arith.constant 0 : index
      %c0_35 = arith.constant 0 : index
      %78 = vector.load %arg8[%c0_34, %c0_35] : memref<16x128xf32, #tpu.memory_space<vmem>>, vector<16x128xf32>
      tpu.vector_store %arg8[%c0_34, %c0_35], %77 {strides = array<i32>} : memref<16x128xf32, #tpu.memory_space<vmem>>, vector<16x128xf32>,
    } else {
    }
    %c0 = arith.constant 0 : index
    %c0_1 = arith.constant 0 : index
    %c0_2 = arith.constant 0 : index
    %3 = vector.load %arg5[%c0, %c0_1, %c0_2] : memref<1x16x128xf32, #tpu.memory_space<vmem>>, vector<1x16x128xf32>
    %c0_3 = arith.constant 0 : index
    %c0_4 = arith.constant 0 : index
    %c0_5 = arith.constant 0 : index
    %4 = vector.load %arg6[%c0_3, %c0_4, %c0_5] : memref<1x16x128xf32, #tpu.memory_space<vmem>>, vector<1x16x128xf32>
    %5 = arith.mulf %3, %3 : vector<1x16x128xf32>
    %6 = arith.mulf %4, %4 : vector<1x16x128xf32>
    %7 = arith.mulf %3, %4 : vector<1x16x128xf32>
    %8 = tpu.concatenate %3, %4, %5, %6, %7 in 0 : vector<1x16x128xf32>, vector<1x16x128xf32>, vector<1x16x128xf32>, vector<1x16x128xf32>, vector<1x16x128xf32> -> vector<5x16x128xf32>
    %9 = vector.shape_cast %8 : vector<5x16x128xf32> to vector<80x128xf32>
    %10 = arith.truncf %9 : vector<80x128xf32> to vector<80x128xbf16>
    %11 = arith.extf %10 : vector<80x128xbf16> to vector<80x128xf32>
    %12 = arith.subf %9, %11 : vector<80x128xf32>
    %13 = arith.truncf %12 : vector<80x128xf32> to vector<80x128xbf16>
    %c0_6 = arith.constant 0 : index
    %c0_7 = arith.constant 0 : index
    %14 = vector.load %arg3[%c0_6, %c0_7] : memref<128x128xbf16, #tpu.memory_space<vmem>>, vector<128x128xbf16>
    %c0_8 = arith.constant 0 : index
    %c0_9 = arith.constant 0 : index
    %15 = vector.load %arg4[%c0_8, %c0_9] : memref<128x128xbf16, #tpu.memory_space<vmem>>, vector<128x128xbf16>
    %cst = arith.constant dense<0.000000e+00> : vector<80x128xf32>
    %16 = tpu.matmul %10, %14, %cst {dimension_numbers = #tpu.dot_dimension_numbers<[1], [0], [0], [1], [0, 0, 1, 1], [], []>} : vector<80x128xbf16>, vector<128x128xbf16>, vector<80x128xf32> -> vector<80x128xf32>
    %cst_10 = arith.constant dense<0.000000e+00> : vector<80x128xf32>
    %17 = tpu.matmul %13, %14, %cst_10 {dimension_numbers = #tpu.dot_dimension_numbers<[1], [0], [0], [1], [0, 0, 1, 1], [], []>} : vector<80x128xbf16>, vector<128x128xbf16>, vector<80x128xf32> -> vector<80x128xf32>
    %18 = arith.addf %16, %17 : vector<80x128xf32>
    %cst_11 = arith.constant dense<0.000000e+00> : vector<80x128xf32>
    %19 = tpu.matmul %10, %15, %cst_11 {dimension_numbers = #tpu.dot_dimension_numbers<[1], [0], [0], [1], [0, 0, 1, 1], [], []>} : vector<80x128xbf16>, vector<128x128xbf16>, vector<80x128xf32> -> vector<80x128xf32>
    %20 = arith.addf %18, %19 : vector<80x128xf32>
    %21 = vector.shape_cast %20 : vector<80x128xf32> to vector<5x16x128xf32>
    %22 = arith.truncf %21 : vector<5x16x128xf32> to vector<5x16x128xbf16>
    %23 = arith.extf %22 : vector<5x16x128xbf16> to vector<5x16x128xf32>
    %24 = arith.subf %21, %23 : vector<5x16x128xf32>
    %25 = arith.truncf %24 : vector<5x16x128xf32> to vector<5x16x128xbf16>
    %c0_12 = arith.constant 0 : index
    %c0_13 = arith.constant 0 : index
    %26 = vector.load %arg1[%c0_12, %c0_13] : memref<16x16xbf16, #tpu.memory_space<vmem>>, vector<16x16xbf16>
    %27 = vector.shape_cast %26 : vector<16x16xbf16> to vector<1x16x16xbf16>
    %28 = vector.broadcast %27 : vector<1x16x16xbf16> to vector<5x16x16xbf16>
    %c0_14 = arith.constant 0 : index
    %c0_15 = arith.constant 0 : index
    %29 = vector.load %arg2[%c0_14, %c0_15] : memref<16x16xbf16, #tpu.memory_space<vmem>>, vector<16x16xbf16>
    %30 = vector.shape_cast %29 : vector<16x16xbf16> to vector<1x16x16xbf16>
    %31 = vector.broadcast %30 : vector<1x16x16xbf16> to vector<5x16x16xbf16>
    "tpu.trace_start"() <{level = 10 : i32, message = "bij,bjk->bik"}> : () -> ()
    %cst_16 = arith.constant dense<0.000000e+00> : vector<5x16x128xf32>
    %32 = tpu.matmul %28, %22, %cst_16 {dimension_numbers = #tpu.dot_dimension_numbers<[2], [1], [1], [2], [0, 0, 0, 1, 1, 2], [0], [0]>} : vector<5x16x16xbf16>, vector<5x16x128xbf16>, vector<5x16x128xf32> -> vector<5x16x128xf32>
    %cst_17 = arith.constant dense<0.000000e+00> : vector<5x16x128xf32>
    %33 = tpu.matmul %28, %25, %cst_17 {dimension_numbers = #tpu.dot_dimension_numbers<[2], [1], [1], [2], [0, 0, 0, 1, 1, 2], [0], [0]>} : vector<5x16x16xbf16>, vector<5x16x128xbf16>, vector<5x16x128xf32> -> vector<5x16x128xf32>
    "tpu.trace_stop"() : () -> ()
    %34 = arith.addf %32, %33 : vector<5x16x128xf32>
    "tpu.trace_start"() <{level = 10 : i32, message = "bij,bjk->bik"}> : () -> ()
    %cst_18 = arith.constant dense<0.000000e+00> : vector<5x16x128xf32>
    %35 = tpu.matmul %31, %22, %cst_18 {dimension_numbers = #tpu.dot_dimension_numbers<[2], [1], [1], [2], [0, 0, 0, 1, 1, 2], [0], [0]>} : vector<5x16x16xbf16>, vector<5x16x128xbf16>, vector<5x16x128xf32> -> vector<5x16x128xf32>
    "tpu.trace_stop"() : () -> ()
    %36 = arith.addf %34, %35 : vector<5x16x128xf32>
    %37 = vector.extract_strided_slice %36 {offsets = [0, 0, 0], sizes = [1, 16, 128], strides = [1, 1, 1]} : vector<5x16x128xf32> to vector<1x16x128xf32>
    %38 = vector.extract_strided_slice %36 {offsets = [1, 0, 0], sizes = [1, 16, 128], strides = [1, 1, 1]} : vector<5x16x128xf32> to vector<1x16x128xf32>
    %39 = vector.extract_strided_slice %36 {offsets = [2, 0, 0], sizes = [1, 16, 128], strides = [1, 1, 1]} : vector<5x16x128xf32> to vector<1x16x128xf32>
    %40 = vector.extract_strided_slice %36 {offsets = [3, 0, 0], sizes = [1, 16, 128], strides = [1, 1, 1]} : vector<5x16x128xf32> to vector<1x16x128xf32>
    %41 = vector.extract_strided_slice %36 {offsets = [4, 0, 0], sizes = [1, 16, 128], strides = [1, 1, 1]} : vector<5x16x128xf32> to vector<1x16x128xf32>
    %42 = arith.mulf %37, %37 : vector<1x16x128xf32>
    %43 = arith.mulf %38, %38 : vector<1x16x128xf32>
    %44 = arith.mulf %37, %38 : vector<1x16x128xf32>
    %45 = arith.subf %39, %42 : vector<1x16x128xf32>
    %46 = arith.subf %40, %43 : vector<1x16x128xf32>
    %47 = arith.subf %41, %44 : vector<1x16x128xf32>
    %cst_19 = arith.constant 2.000000e+00 : f32
    %48 = vector.broadcast %cst_19 : f32 to vector<1x16x128xf32>
    %49 = arith.mulf %48, %44 : vector<1x16x128xf32>
    %cst_20 = arith.constant 9.99999974E-5 : f32
    %50 = vector.broadcast %cst_20 : f32 to vector<1x16x128xf32>
    %51 = arith.addf %49, %50 : vector<1x16x128xf32>
    %cst_21 = arith.constant 2.000000e+00 : f32
    %52 = vector.broadcast %cst_21 : f32 to vector<1x16x128xf32>
    %53 = arith.mulf %52, %47 : vector<1x16x128xf32>
    %cst_22 = arith.constant 8.99999984E-4 : f32
    %54 = vector.broadcast %cst_22 : f32 to vector<1x16x128xf32>
    %55 = arith.addf %53, %54 : vector<1x16x128xf32>
    %56 = arith.mulf %51, %55 : vector<1x16x128xf32>
    %57 = arith.addf %42, %43 : vector<1x16x128xf32>
    %cst_23 = arith.constant 9.99999974E-5 : f32
    %58 = vector.broadcast %cst_23 : f32 to vector<1x16x128xf32>
    %59 = arith.addf %57, %58 : vector<1x16x128xf32>
    %60 = arith.addf %45, %46 : vector<1x16x128xf32>
    %cst_24 = arith.constant 8.99999984E-4 : f32
    %61 = vector.broadcast %cst_24 : f32 to vector<1x16x128xf32>
    %62 = arith.addf %60, %61 : vector<1x16x128xf32>
    %63 = arith.mulf %59, %62 : vector<1x16x128xf32>
    %64 = tpu.reciprocal %63 {approx = true} : vector<1x16x128xf32> -> vector<1x16x128xf32>
    %65 = arith.mulf %63, %64 : vector<1x16x128xf32>
    %cst_25 = arith.constant 2.000000e+00 : f32
    %66 = vector.broadcast %cst_25 : f32 to vector<1x16x128xf32>
    %67 = arith.subf %66, %65 : vector<1x16x128xf32>
    %68 = arith.mulf %64, %67 : vector<1x16x128xf32>
    %c0_26 = arith.constant 0 : index
    %c0_27 = arith.constant 0 : index
    %69 = vector.load %arg8[%c0_26, %c0_27] : memref<16x128xf32, #tpu.memory_space<vmem>>, vector<16x128xf32>
    %70 = arith.mulf %56, %68 : vector<1x16x128xf32>
    %cst_28 = arith.constant dense<0.000000e+00> : vector<16x128xf32>
    %71 = vector.multi_reduction <add>, %70, %cst_28 [0] : vector<1x16x128xf32> to vector<16x128xf32>
    %72 = arith.addf %69, %71 : vector<16x128xf32>
    %c0_29 = arith.constant 0 : index
    %c0_30 = arith.constant 0 : index
    %73 = vector.load %arg8[%c0_29, %c0_30] : memref<16x128xf32, #tpu.memory_space<vmem>>, vector<16x128xf32>
    tpu.vector_store %arg8[%c0_29, %c0_30], %72 {strides = array<i32>} : memref<16x128xf32, #tpu.memory_space<vmem>>, vector<16x128xf32>,
    %c0_i32_31 = arith.constant 0 : i32
    %74 = arith.cmpi eq, %arg0, %c0_i32_31 : i32
    %75 = arith.extui %74 : i1 to i32
    %c0_i32_32 = arith.constant 0 : i32
    %76 = arith.cmpi ne, %75, %c0_i32_32 : i32
    scf.if %76 {
      %c0_33 = arith.constant 0 : index
      %c0_34 = arith.constant 0 : index
      %77 = vector.load %arg8[%c0_33, %c0_34] : memref<16x128xf32, #tpu.memory_space<vmem>>, vector<16x128xf32>
      %78 = vector.shape_cast %77 : vector<16x128xf32> to vector<1x16x128xf32>
      %cst_35 = arith.constant dense<0.000000e+00> : vector<1xf32>
      %79 = vector.multi_reduction <add>, %78, %cst_35 [1, 2] : vector<1x16x128xf32> to vector<1xf32>
      %80 = vector.shape_cast %79 : vector<1xf32> to vector<1x1x1xf32>
      %81 = vector.extract %80[0, 0, 0] : f32 from vector<1x1x1xf32>
      %cst_36 = arith.constant 0.000000e+00 : f32
      %82 = arith.subf %81, %cst_36 : f32
      %cst_37 = arith.constant 4.8828125E-4 : f32
      %83 = arith.mulf %82, %cst_37 : f32
      %cst_38 = arith.constant 1.000000e+00 : f32
      %84 = arith.subf %cst_38, %83 : f32
      %c0_39 = arith.constant 0 : index
      %c0_40 = arith.constant 0 : index
      %85 = memref.load %arg7[%c0_39, %c0_40] : memref<1x1xf32, #tpu.memory_space<smem>>
      memref.store %84, %arg7[%c0_39, %c0_40] : memref<1x1xf32, #tpu.memory_space<smem>>
    } else {
    }
    return
  }
  func.func @transform_0(%arg0: i32) -> (i32, i32) {
    %c0_i32 = arith.constant 0 : i32
    %c0_i32_0 = arith.constant 0 : i32
    %c0_i32_1 = arith.constant 0 : i32
    return %c0_i32, %c0_i32_0 : i32, i32
  }
  func.func @transform_1(%arg0: i32) -> (i32, i32) {
    %c0_i32 = arith.constant 0 : i32
    %c0_i32_0 = arith.constant 0 : i32
    %c0_i32_1 = arith.constant 0 : i32
    return %c0_i32, %c0_i32_0 : i32, i32
  }
  func.func @transform_2(%arg0: i32) -> (i32, i32) {
    %c0_i32 = arith.constant 0 : i32
    %c0_i32_0 = arith.constant 0 : i32
    %c0_i32_1 = arith.constant 0 : i32
    return %c0_i32, %c0_i32_0 : i32, i32
  }
  func.func @transform_3(%arg0: i32) -> (i32, i32) {
    %c0_i32 = arith.constant 0 : i32
    %c0_i32_0 = arith.constant 0 : i32
    %c0_i32_1 = arith.constant 0 : i32
    return %c0_i32, %c0_i32_0 : i32, i32
  }
  func.func @transform_4(%arg0: i32) -> (i32, i32, i32) {
    %c0_i32 = arith.constant 0 : i32
    %c0_i32_0 = arith.constant 0 : i32
    %c0_i32_1 = arith.constant 0 : i32
    return %arg0, %c0_i32, %c0_i32_0 : i32, i32, i32
  }
  func.func @transform_5(%arg0: i32) -> (i32, i32, i32) {
    %c0_i32 = arith.constant 0 : i32
    %c0_i32_0 = arith.constant 0 : i32
    %c0_i32_1 = arith.constant 0 : i32
    return %arg0, %c0_i32, %c0_i32_0 : i32, i32, i32
  }
  func.func @transform_6(%arg0: i32) -> (i32, i32) {
    %c0_i32 = arith.constant 0 : i32
    %c0_i32_0 = arith.constant 0 : i32
    %c0_i32_1 = arith.constant 0 : i32
    return %c0_i32, %c0_i32_0 : i32, i32
  }
}

</mosaic_0001>

<bundles_post_ra>
// kernel: tpu_custom_call.1
= control target key start
LH: loop header
LB: loop body
LE: loop exit
PB: predicated region body
PF: predicated region fallthrough
CT: control target
= control target key end

     0   :  { %11 = vsyncpa [#allocation4], 0  ;;  %s2040_s0 = inlined_call_operand.hbm [shape: bf16[16,16], index: 0, kind: input, shape index: {}]   ;;  %s2041_s1 = inlined_call_operand.hbm [shape: bf16[16,16], index: 1, kind: input, shape index: {}]   ;;  %s2042_s2 = inlined_call_operand.hbm [shape: bf16[128,128], index: 2, kind: input, shape index: {}]   ;;  %s2043_s3 = inlined_call_operand.hbm [shape: bf16[128,128], index: 3, kind: input, shape index: {}]   ;;  %s2044_s4 = inlined_call_operand.hbm [shape: f32[1,16,128], index: 4, kind: input, shape index: {}]   ;;  %s2045_s5 = inlined_call_operand.hbm [shape: f32[1,16,128], index: 5, kind: input, shape index: {}]   ;;  %s2046_s6 = inlined_call_operand.hbm [shape: f32[1,1], index: 6, kind: output, shape index: {}]  }
   0x1   :  { %12 = vsyncpa [#allocation7], 0 }
   0x2   :  { %13 = vsyncpa [#allocation10], 0 }
   0x3   :  { %14 = vsyncpa [#allocation13], 0 }
   0x4   :  { %15 = vsyncpa [#allocation5], 0  ;;  %s1747_s21 = smov [#allocation6]   ;;  %s1748_s23 = smov [#allocation9]  }
   0x5   :  { %s33_s22 = sshll.u32 %s1747_s21, 4  ;;  %s57_s24 = sshll.u32 %s1748_s23, 4  ;;  %s34_s22 = int_to_ptr.vmem [resolvable:$true] %s33_s22  ;;  %s58_s24 = int_to_ptr.vmem [resolvable:$true] %s57_s24 }
   0x6   :  { %s1617_s25 = scalar_lea.vmem %s34_s22, 128  ;;  %p1622_p1 = scmp.lt.s32.totalorder %s34_s22, %s34_s22 }
   0x7   :  { %p1618_p0 = scmp.ne.s32.totalorder %s34_s22, %s1617_s25  ;;  %p1623_p2 = scmp.lt.s32.totalorder %s1617_s25, %s1617_s25 }
   0x9   :  { %p1624_p3 = por %p1623_p2, %p1622_p1 }
   0xb   :  { %p1625_p4 = pnand %p1624_p3, %p1618_p0 }
   0xd   :  { %1628 = shalt.err (!%p1625_p4)
}
   0xe   :  { %s1749_s26 = smov 64   ;;  %s1750_s27 = smov 4  }
   0xf   :  { %39 = dma.hbm_to_vmem [thread:$0]  %s2041_s1, 128, %s34_s22, [#allocation7], %s1749_s26, %s1749_s26, %s1750_s27  }
  0x10   :  { %s1637_s30 = scalar_lea.vmem %s58_s24, 1024  ;;  %p1642_p6 = scmp.lt.s32.totalorder %s58_s24, %s58_s24 }
  0x11   :  { %p1638_p5 = scmp.ne.s32.totalorder %s58_s24, %s1637_s30  ;;  %p1643_p7 = scmp.lt.s32.totalorder %s1637_s30, %s1637_s30 }
  0x13   :  { %p1644_p8 = por %p1643_p7, %p1642_p6 }
  0x15   :  { %p1645_p9 = pnand %p1644_p8, %p1638_p5 }
  0x17   :  { %1648 = shalt.err (!%p1645_p9)
}
  0x18   :  { %63 = dma.hbm_to_vmem [thread:$0]  %s2043_s3, 1024, %s58_s24, [#allocation10], %s1749_s26, %s1749_s26, %s1750_s27  }
  0x19   :  { %s1751_s9 = smov [#allocation3]   ;;  %s1752_s11 = smov [#allocation8]  }
  0x1a   :  { %s21_s10 = sshll.u32 %s1751_s9, 4  ;;  %s45_s12 = sshll.u32 %s1752_s11, 4  ;;  %s22_s10 = int_to_ptr.vmem [resolvable:$true] %s21_s10  ;;  %s46_s12 = int_to_ptr.vmem [resolvable:$true] %s45_s12 }
  0x1b   :  { %s1657_s1 = scalar_lea.vmem %s22_s10, 128  ;;  %p1662_p11 = scmp.lt.s32.totalorder %s22_s10, %s22_s10 }
  0x1c   :  { %p1658_p10 = scmp.ne.s32.totalorder %s22_s10, %s1657_s1  ;;  %p1663_p12 = scmp.lt.s32.totalorder %s1657_s1, %s1657_s1 }
  0x1e   :  { %p1664_p13 = por %p1663_p12, %p1662_p11 }
  0x20   :  { %p1665_p0 = pnand %p1664_p13, %p1658_p10 }
  0x22   :  { %1668 = shalt.err (!%p1665_p0)
}
  0x23   :  { %27 = dma.hbm_to_vmem [thread:$0]  %s2040_s0, 128, %s22_s10, [#allocation4], %s1749_s26, %s1749_s26, %s1750_s27  }
  0x24   :  { %s1677_s3 = scalar_lea.vmem %s46_s12, 1024  ;;  %p1682_p2 = scmp.lt.s32.totalorder %s46_s12, %s46_s12 }
  0x25   :  { %p1678_p1 = scmp.ne.s32.totalorder %s46_s12, %s1677_s3  ;;  %p1683_p3 = scmp.lt.s32.totalorder %s1677_s3, %s1677_s3 }
  0x27   :  { %p1684_p4 = por %p1683_p3, %p1682_p2 }
  0x29   :  { %p1685_p5 = pnand %p1684_p4, %p1678_p1 }
  0x2b   :  { %1688 = shalt.err (!%p1685_p5)
}
  0x2c   :  { %51 = dma.hbm_to_vmem [thread:$0]  %s2042_s2, 1024, %s46_s12, [#allocation7], %s1749_s26, %s1749_s26, %s1750_s27  }
  0x2d   :  { %s1753_s17 = smov [#allocation11]  }
  0x2e   :  { %s69_s18 = sshll.u32 %s1753_s17, 4  ;;  %s70_s18 = int_to_ptr.vmem [resolvable:$true] %s69_s18 }
  0x2f   :  { %s1697_s19 = scalar_lea.vmem %s70_s18, 256  ;;  %p1702_p7 = scmp.lt.s32.totalorder %s70_s18, %s70_s18 }
  0x30   :  { %p1698_p6 = scmp.ne.s32.totalorder %s70_s18, %s1697_s19  ;;  %p1703_p8 = scmp.lt.s32.totalorder %s1697_s19, %s1697_s19 }
  0x32   :  { %p1704_p9 = por %p1703_p8, %p1702_p7 }
  0x34   :  { %p1705_p10 = pnand %p1704_p9, %p1698_p6 }
  0x36   :  { %1708 = shalt.err (!%p1705_p10)
}
  0x37   :  { %s1754_s0 = smov 128   ;;  %s1755_s20 = smov 8  }
  0x38   :  { %75 = dma.hbm_to_vmem [thread:$0]  %s2044_s4, 256, %s70_s18, [#allocation10], %s1754_s0, %s1754_s0, %s1755_s20  }
  0x39   :  { %s1756_s23 = smov [#allocation12]  }
  0x3a   :  { %s81_s24 = sshll.u32 %s1756_s23, 4  ;;  %s82_s24 = int_to_ptr.vmem [resolvable:$true] %s81_s24 }
  0x3b   :  { %s1717_s2 = scalar_lea.vmem %s82_s24, 256  ;;  %p1722_p12 = scmp.lt.s32.totalorder %s82_s24, %s82_s24 }
  0x3c   :  { %p1718_p11 = scmp.ne.s32.totalorder %s82_s24, %s1717_s2  ;;  %p1723_p13 = scmp.lt.s32.totalorder %s1717_s2, %s1717_s2 }
  0x3e   :  { %p1724_p0 = por %p1723_p13, %p1722_p12 }
  0x40   :  { %p1725_p1 = pnand %p1724_p0, %p1718_p11 }
  0x42   :  { %1728 = shalt.err (!%p1725_p1)
}
  0x43   :  { %87 = dma.hbm_to_vmem [thread:$0]  %s2045_s5, 256, %s82_s24, [#allocation13], %s1754_s0, %s1754_s0, %s1755_s20  }
  0x44   :  { %1737 = dma.done.wait [#allocation4], 128  }
  0x45   :  { %1738 = vsyncadd [#allocation4], 4294967168 }
  0x46   :  { %1739 = dma.done.wait [#allocation7], 1152  }
  0x47   :  { %1740 = vsyncadd [#allocation7], 4294966144 }
  0x48   :  { %1741 = dma.done.wait [#allocation10], 1280  }
  0x49   :  { %1742 = vsyncadd [#allocation10], 4294966016 }
  0x4a   :  { %1743 = dma.done.wait [#allocation13], 256  }
  0x4b   :  { %1744 = vsyncadd [#allocation13], 4294967040  ;;  %v1757_v0 = vmov 0.0   ;;  %vm1758_vm0 = vmmov 0   ;;  %v1587_v1 = vld [vmem:[#allocation8 + $0x38] sm:$0xff]   ;;  %v1588_v2 = vld [vmem:[#allocation8 + $0x30] sm:$0xff]  }
  0x4c   :  { %1374 = vmatprep.subr.bf16.mxu0 %v1757_v0  ;;  %1410 = vmatprep.subr.bf16.mxu1 %v1757_v0  ;;  %v1589_v3 = vld [vmem:[#allocation8 + $0x28] sm:$0xff]   ;;  %v1590_v4 = vld [vmem:[#allocation8 + $0x20] sm:$0xff]   ;;  %v1591_v5 = vld [vmem:[#allocation8 + $0x18] sm:$0xff]   ;;  %vm549_vm1 = vcmask 130048   ;;  %s1759_s28 = smov [#allocation14]  }
  0x4d   :  { %1390 = vmatprep.mubr.msk.bf16.mxu0 %vm1758_vm0, %v1757_v0  ;;  %1426 = vmatprep.mubr.msk.bf16.mxu1 %vm1758_vm0, %v1757_v0  ;;  %v1837_v6 = vld [vmem:[#allocation11] sm:$0xff]  ;;  %v1839_v7 = vld [vmem:[#allocation11 + $0x8] sm:$0xff]  ;;  %v1592_v9 = vld [vmem:[#allocation8 + $0x10] sm:$0xff]  }
  0x4e   :  { %1375 = vmatpush3.bf16.msra.mxu0 %v1587_v1  ;;  %1411 = vmatpush3.bf16.msra.mxu1 %v1587_v1  ;;  %v1845_v8 = vpack.c.bf16 %v1839_v7, %v1837_v6  ;;  %v1593_v12 = vld [vmem:[#allocation8 + $0x8] sm:$0xff]   ;;  %v115_v13 = vld [vmem:[#allocation12] sm:$0xff]  ;;  %v116_v14 = vld [vmem:[#allocation12 + $0x8] sm:$0xff]  ;;  %v117_v19 = vmul.f32 %v1837_v6, %v1837_v6  ;;  %v118_v23 = vmul.f32 %v1839_v7, %v1839_v7 }
  0x4f   :  { %1376 = vmatprep.subr.bf16.mxu0 %v1757_v0  ;;  %1412 = vmatprep.subr.bf16.mxu1 %v1757_v0  ;;  %v1855_v17 = vpack.c.bf16 %v116_v14, %v115_v13  ;;  %v1594_v18 = vld [vmem:[#allocation8] sm:$0xff]   ;;  %v1595_v24 = vld [vmem:[#allocation9 + $0x38] sm:$0xff]   ;;  %v1596_v28 = vld [vmem:[#allocation9 + $0x30] sm:$0xff]   ;;  %v119_v29 = vmul.f32 %v115_v13, %v115_v13  ;;  %v120_v33 = vmul.f32 %v116_v14, %v116_v14 }
  0x50   :  { %v128_v10 = vunpack.c.l.bf16 %v1845_v8  ;;  %v129_v11 = vunpack.c.h.bf16 %v1845_v8  ;;  %v1868_v27 = vpack.c.bf16 %v118_v23, %v117_v19  ;;  %v1597_v34 = vld [vmem:[#allocation9 + $0x28] sm:$0xff]   ;;  %v1598_v38 = vld [vmem:[#allocation9 + $0x20] sm:$0xff]   ;;  %v121_v39 = vmul.f32 %v115_v13, %v1837_v6  ;;  %v1599_v44 = vld [vmem:[#allocation9 + $0x18] sm:$0xff]  }
  0x51   :  { %v130_v21 = vunpack.c.l.bf16 %v1855_v17  ;;  %v131_v22 = vunpack.c.h.bf16 %v1855_v17  ;;  %v126_v37 = vpack.c.bf16 %v120_v33, %v119_v29  ;;  %v122_v43 = vmul.f32 %v116_v14, %v1839_v7  ;;  %v1600_v48 = vld [vmem:[#allocation9 + $0x10] sm:$0xff]   ;;  %v1601_v52 = vld [vmem:[#allocation9 + $0x8] sm:$0xff]   ;;  %v1602_v55 = vld [vmem:[#allocation9] sm:$0xff]  }
  0x52   :  { %1377 = vmatpush3.bf16.msra.mxu0 %v1588_v2  ;;  %1413 = vmatpush3.bf16.msra.mxu1 %v1588_v2  ;;  %v138_v15 = vsub.f32 %v1837_v6, %v128_v10  ;;  %v139_v16 = vsub.f32 %v1839_v7, %v129_v11  ;;  %v132_v31 = vunpack.c.l.bf16 %v1868_v27  ;;  %v133_v32 = vunpack.c.h.bf16 %v1868_v27 }
  0x53   :  { %1378 = vmatprep.subr.bf16.mxu0 %v1757_v0  ;;  %1414 = vmatprep.subr.bf16.mxu1 %v1757_v0  ;;  %v140_v25 = vsub.f32 %v115_v13, %v130_v21  ;;  %v141_v26 = vsub.f32 %v116_v14, %v131_v22  ;;  %v134_v41 = vunpack.c.l.bf16 %v126_v37  ;;  %v135_v42 = vunpack.c.h.bf16 %v126_v37 }
  0x54   :  { %v148_v20 = vpack.c.bf16 %v139_v16, %v138_v15  ;;  %v142_v35 = vsub.f32 %v117_v19, %v132_v31  ;;  %v143_v36 = vsub.f32 %v118_v23, %v133_v32  ;;  %v127_v47 = vpack.c.bf16 %v122_v43, %v121_v39 }
  0x55   :  { %v149_v30 = vpack.c.bf16 %v141_v26, %v140_v25  ;;  %v144_v45 = vsub.f32 %v119_v29, %v134_v41  ;;  %v145_v46 = vsub.f32 %v120_v33, %v135_v42 }
  0x56   :  { %1379 = vmatpush3.bf16.msra.mxu0 %v1589_v3  ;;  %1415 = vmatpush3.bf16.msra.mxu1 %v1589_v3  ;;  %v150_v40 = vpack.c.bf16 %v143_v36, %v142_v35  ;;  %v136_v50 = vunpack.c.l.bf16 %v127_v47  ;;  %v137_v51 = vunpack.c.h.bf16 %v127_v47 }
  0x57   :  { %1380 = vmatprep.subr.bf16.mxu0 %v1757_v0  ;;  %1416 = vmatprep.subr.bf16.mxu1 %v1757_v0  ;;  %v151_v49 = vpack.c.bf16 %v145_v46, %v144_v45 }
  0x58   :  { %v146_v53 = vsub.f32 %v121_v39, %v136_v50  ;;  %v147_v54 = vsub.f32 %v122_v43, %v137_v51 }
  0x5a   :  { %1381 = vmatpush3.bf16.msra.mxu0 %v1590_v4  ;;  %1417 = vmatpush3.bf16.msra.mxu1 %v1590_v4  ;;  %v152_v56 = vpack.c.bf16 %v147_v54, %v146_v53 }
  0x5b   :  { %1382 = vmatprep.subr.bf16.mxu0 %v1757_v0  ;;  %1418 = vmatprep.subr.bf16.mxu1 %v1757_v0 }
  0x5e   :  { %1383 = vmatpush3.bf16.msra.mxu0 %v1591_v5  ;;  %1419 = vmatpush3.bf16.msra.mxu1 %v1591_v5 }
  0x5f   :  { %1384 = vmatprep.subr.bf16.mxu0 %v1757_v0  ;;  %1420 = vmatprep.subr.bf16.mxu1 %v1757_v0 }
  0x62   :  { %1385 = vmatpush3.bf16.msra.mxu0 %v1592_v9  ;;  %1421 = vmatpush3.bf16.msra.mxu1 %v1592_v9 }
  0x63   :  { %1386 = vmatprep.subr.bf16.mxu0 %v1757_v0  ;;  %1422 = vmatprep.subr.bf16.mxu1 %v1757_v0 }
  0x66   :  { %1387 = vmatpush3.bf16.msra.mxu0 %v1593_v12  ;;  %1423 = vmatpush3.bf16.msra.mxu1 %v1593_v12 }
  0x67   :  { %1388 = vmatprep.subr.bf16.mxu0 %v1757_v0  ;;  %1424 = vmatprep.subr.bf16.mxu1 %v1757_v0 }
  0x6a   :  { %1389 = vmatpush3.bf16.msra.mxu0 %v1594_v18  ;;  %1425 = vmatpush3.bf16.msra.mxu1 %v1594_v18 }
  0x6b   :  { %1446 = vmatprep.subr.bf16.mxu0 %v1757_v0  ;;  %1482 = vmatprep.subr.bf16.mxu1 %v1757_v0 }
  0x6d   :  { %1391 = vmatmul.mubr.bf16.vlgmr.msra.gmra.mxu0 %v148_v20  ;;  %1427 = vmatmul.mubr.bf16.vlgmr.msra.gmra.mxu1 %v1845_v8 }
  0x6e   :  { %1394 = vmatprep.mubr.msk.bf16.mxu0 %vm1758_vm0, %v1757_v0  ;;  %1430 = vmatprep.mubr.msk.bf16.mxu1 %vm1758_vm0, %v1757_v0 }
  0x6f   :  { %1447 = vmatpush3.bf16.msra.mxu0 %v1595_v24 }
  0x70   :  { %1448 = vmatprep.subr.bf16.mxu0 %v1757_v0 }
  0x73   :  { %1449 = vmatpush3.bf16.msra.mxu0 %v1596_v28 }
  0x74   :  { %1450 = vmatprep.subr.bf16.mxu0 %v1757_v0 }
  0x75   :  { %1395 = vmatmul.mubr.bf16.gmra.mxu0 %v149_v30  ;;  %1431 = vmatmul.mubr.bf16.gmra.mxu1 %v1855_v17 }
  0x76   :  { %1398 = vmatprep.mubr.msk.bf16.mxu0 %vm1758_vm0, %v1757_v0  ;;  %1434 = vmatprep.mubr.msk.bf16.mxu1 %vm1758_vm0, %v1757_v0 }
  0x77   :  { %1451 = vmatpush3.bf16.msra.mxu0 %v1597_v34 }
  0x78   :  { %1452 = vmatprep.subr.bf16.mxu0 %v1757_v0 }
  0x7b   :  { %1453 = vmatpush3.bf16.msra.mxu0 %v1598_v38 }
  0x7c   :  { %1454 = vmatprep.subr.bf16.mxu0 %v1757_v0 }
  0x7d   :  { %1399 = vmatmul.mubr.bf16.gmra.mxu0 %v150_v40  ;;  %1435 = vmatmul.mubr.bf16.gmra.mxu1 %v1868_v27 }
  0x7e   :  { %1402 = vmatprep.mubr.msk.bf16.mxu0 %vm1758_vm0, %v1757_v0  ;;  %1438 = vmatprep.mubr.msk.bf16.mxu1 %vm1758_vm0, %v1757_v0 }
  0x7f   :  { %1455 = vmatpush3.bf16.msra.mxu0 %v1599_v44  ;;  %v1935_v44 = vld [vmem:[#allocation3] sm:$0xff]  }
  0x80   :  { %1456 = vmatprep.subr.bf16.mxu0 %v1757_v0 }
  0x83   :  { %1457 = vmatpush3.bf16.msra.mxu0 %v1600_v48 }
  0x84   :  { %1458 = vmatprep.subr.bf16.mxu0 %v1757_v0 }
  0x85   :  { %1403 = vmatmul.mubr.bf16.gmra.mxu0 %v151_v49  ;;  %1439 = vmatmul.mubr.bf16.gmra.mxu1 %v126_v37 }
  0x86   :  { %1406 = vmatprep.mubr.msk.bf16.mxu0 %vm1758_vm0, %v1757_v0  ;;  %1442 = vmatprep.mubr.msk.bf16.mxu1 %vm1758_vm0, %v1757_v0 }
  0x87   :  { %1459 = vmatpush3.bf16.msra.mxu0 %v1601_v52 }
  0x88   :  { %1460 = vmatprep.subr.bf16.mxu0 %v1757_v0 }
  0x8b   :  { %1461 = vmatpush3.bf16.msra.mxu0 %v1602_v55 }
  0x8c   :  { %1512 = vmatprep.subr.bf16.mxu0 %v1757_v0 }
  0x8d   :  { %1407 = vmatmul.mubr.bf16.gmra.mxu0 %v152_v56  ;;  %1443 = vmatmul.mubr.bf16.gmra.mxu1 %v127_v47 }
  0x8e   :  { %1462 = vmatprep.mubr.msk.bf16.mxu0 %vm1758_vm0, %v1757_v0  ;;  %1484 = vmatprep.mubr.msk.bf16.mxu1 %vm1758_vm0, %v1757_v0 }
  0x95   :  { %1463 = vmatmul.mubr.bf16.vlgmr.msra.gmra.mxu0 %v1845_v8 }
  0x96   :  { %1466 = vmatprep.mubr.msk.bf16.mxu0 %vm1758_vm0, %v1757_v0 }
  0x9d   :  { %1467 = vmatmul.mubr.bf16.gmra.mxu0 %v1855_v17 }
  0x9e   :  { %1470 = vmatprep.mubr.msk.bf16.mxu0 %vm1758_vm0, %v1757_v0 }
  0xa5   :  { %1471 = vmatmul.mubr.bf16.gmra.mxu0 %v1868_v27 }
  0xa6   :  { %1474 = vmatprep.mubr.msk.bf16.mxu0 %vm1758_vm0, %v1757_v0 }
  0xad   :  { %1475 = vmatmul.mubr.bf16.gmra.mxu0 %v126_v37 }
  0xae   :  { %1478 = vmatprep.mubr.msk.bf16.mxu0 %vm1758_vm0, %v1757_v0 }
  0xb5   :  { %1479 = vmatmul.mubr.bf16.gmra.mxu0 %v127_v47 }
  0xb6   :  { %1514 = vmatprep.mubr.msk.bf16.mxu0 %vm1758_vm0, %v1757_v0 }
 0x12d   :  { %v267_v57 = vpop.f32.mrf.mxu0  ;;  %v340_v58 = vpop.f32.mrf.mxu1 }
 0x12e   :  { %v341_v36 = vadd.f32 %v340_v58, %v267_v57 }
 0x12f   :  { %v1392_v59 = vpop.f32.mrf.mxu0  ;;  %v1428_v60 = vpop.f32.mrf.mxu1 }
 0x131   :  { %v270_v61 = vpop.f32.mrf.mxu0  ;;  %v343_v62 = vpop.f32.mrf.mxu1 }
 0x132   :  { %v344_v37 = vadd.f32 %v343_v62, %v270_v61 }
 0x133   :  { %v1393_v63 = vpop.f32.mrf.mxu0  ;;  %v1429_v1 = vpop.f32.mrf.mxu1 }
 0x135   :  { %v275_v2 = vpop.f32.mrf.mxu0  ;;  %v348_v3 = vpop.f32.mrf.mxu1 }
 0x136   :  { %v349_v48 = vadd.f32 %v348_v3, %v275_v2 }
 0x137   :  { %v1396_v4 = vpop.f32.mrf.mxu0  ;;  %v1432_v5 = vpop.f32.mrf.mxu1 }
 0x139   :  { %v278_v6 = vpop.f32.mrf.mxu0  ;;  %v351_v7 = vpop.f32.mrf.mxu1 }
 0x13a   :  { %v352_v49 = vadd.f32 %v351_v7, %v278_v6 }
 0x13b   :  { %v1397_v8 = vpop.f32.mrf.mxu0  ;;  %v1433_v9 = vpop.f32.mrf.mxu1 }
 0x13d   :  { %v283_v10 = vpop.f32.mrf.mxu0  ;;  %v356_v11 = vpop.f32.mrf.mxu1 }
 0x13e   :  { %v357_v62 = vadd.f32 %v356_v11, %v283_v10 }
 0x13f   :  { %v1400_v12 = vpop.f32.mrf.mxu0  ;;  %v1436_v13 = vpop.f32.mrf.mxu1 }
 0x141   :  { %v286_v14 = vpop.f32.mrf.mxu0  ;;  %v359_v15 = vpop.f32.mrf.mxu1 }
 0x142   :  { %v360_v63 = vadd.f32 %v359_v15, %v286_v14 }
 0x143   :  { %v1401_v16 = vpop.f32.mrf.mxu0  ;;  %v1437_v17 = vpop.f32.mrf.mxu1 }
 0x145   :  { %v1917_v18 = vpop.f32.mrf.mxu0  ;;  %v1919_v19 = vpop.f32.mrf.mxu1 }
 0x146   :  { %v365_v13 = vadd.f32 %v1919_v19, %v1917_v18 }
 0x147   :  { %v1404_v20 = vpop.f32.mrf.mxu0  ;;  %v1440_v21 = vpop.f32.mrf.mxu1 }
 0x149   :  { %v1921_v22 = vpop.f32.mrf.mxu0  ;;  %v1923_v23 = vpop.f32.mrf.mxu1 }
 0x14a   :  { %v368_v14 = vadd.f32 %v1923_v23, %v1921_v22 }
 0x14b   :  { %v1405_v24 = vpop.f32.mrf.mxu0  ;;  %v1441_v25 = vpop.f32.mrf.mxu1 }
 0x14d   :  { %v1925_v26 = vpop.f32.mrf.mxu0  ;;  %v1927_v27 = vpop.f32.mrf.mxu1 }
 0x14f   :  { %v1408_v28 = vpop.f32.mrf.mxu0  ;;  %v1444_v29 = vpop.f32.mrf.mxu1 }
 0x150   :  { %v373_v29 = vadd.f32 %v1927_v27, %v1925_v26 }
 0x151   :  { %v1929_v30 = vpop.f32.mrf.mxu0  ;;  %v1931_v31 = vpop.f32.mrf.mxu1 }
 0x153   :  { %v1409_v32 = vpop.f32.mrf.mxu0  ;;  %v1445_v33 = vpop.f32.mrf.mxu1 }
 0x154   :  { %v376_v32 = vadd.f32 %v1931_v31, %v1929_v30  ;;  %v1604_v31 = vld [vmem:[#allocation6] sm:$0xff]  }
 0x155   :  { %v461_v34 = vpop.f32.mrf.mxu0 }
 0x156   :  { %v500_v39 = vadd.f32 %v461_v34, %v341_v36 }
 0x157   :  { %v1464_v35 = vpop.f32.mrf.mxu0 }
 0x159   :  { %v464_v38 = vpop.f32.mrf.mxu0 }
 0x15a   :  { %v501_v40 = vadd.f32 %v464_v38, %v344_v37 }
 0x15b   :  { %v1465_v41 = vpop.f32.mrf.mxu0 }
 0x15c   :  { %v1933_v42 = vpack.c.bf16 %v501_v40, %v500_v39 }
 0x15d   :  { %v469_v43 = vpop.f32.mrf.mxu0 }
 0x15e   :  { %v515_v45 = vunpack.c.l.bf16 %v1933_v42  ;;  %v516_v46 = vunpack.c.h.bf16 %v1933_v42  ;;  %1513 = vmatpush3.bf16.msra.mxu0 %v1933_v42  ;;  %v502_v54 = vadd.f32 %v469_v43, %v349_v48 }
 0x15f   :  { %v1468_v47 = vpop.f32.mrf.mxu0  ;;  %1524 = vmatprep.subr.bf16.mxu0 %v1757_v0 }
 0x160   :  { %v525_v50 = vsub.f32 %v500_v39, %v515_v45  ;;  %v526_v51 = vsub.f32 %v501_v40, %v516_v46 }
 0x161   :  { %v472_v52 = vpop.f32.mrf.mxu0  ;;  %1515 = vmatmul.mubr.msk.bf16.vlgmr.msra.gmra.mxu0 %vm549_vm1, %v1935_v44 }
 0x162   :  { %v535_v53 = vpack.c.bf16 %v526_v51, %v525_v50  ;;  %v503_v55 = vadd.f32 %v472_v52, %v352_v49  ;;  %1526 = vmatprep.mubr.msk.bf16.mxu0 %vm1758_vm0, %v1757_v0 }
 0x163   :  { %v1469_v56 = vpop.f32.mrf.mxu0 }
 0x164   :  { %v1945_v57 = vpack.c.bf16 %v503_v55, %v502_v54  ;;  %1483 = vmatpush3.bf16.msra.mxu1 %v535_v53 }
 0x165   :  { %v477_v58 = vpop.f32.mrf.mxu0  ;;  %1488 = vmatprep.subr.bf16.mxu1 %v1757_v0 }
 0x166   :  { %v517_v59 = vunpack.c.l.bf16 %v1945_v57  ;;  %v518_v60 = vunpack.c.h.bf16 %v1945_v57  ;;  %v504_v5 = vadd.f32 %v477_v58, %v357_v62 }
 0x167   :  { %v1472_v61 = vpop.f32.mrf.mxu0  ;;  %1485 = vmatmul.mubr.msk.bf16.vlgmr.msra.gmra.mxu1 %vm549_vm1, %v1935_v44 }
 0x168   :  { %v527_v1 = vsub.f32 %v502_v54, %v517_v59  ;;  %v528_v2 = vsub.f32 %v503_v55, %v518_v60  ;;  %1490 = vmatprep.mubr.msk.bf16.mxu1 %vm1758_vm0, %v1757_v0 }
 0x169   :  { %v480_v3 = vpop.f32.mrf.mxu0 }
 0x16a   :  { %v536_v4 = vpack.c.bf16 %v528_v2, %v527_v1  ;;  %v505_v6 = vadd.f32 %v480_v3, %v360_v63 }
 0x16b   :  { %v1473_v7 = vpop.f32.mrf.mxu0 }
 0x16c   :  { %v1954_v8 = vpack.c.bf16 %v505_v6, %v504_v5  ;;  %1489 = vmatpush3.bf16.msra.mxu1 %v536_v4 }
 0x16d   :  { %v485_v9 = vpop.f32.mrf.mxu0  ;;  %1494 = vmatprep.subr.bf16.mxu1 %v1757_v0 }
 0x16e   :  { %v519_v12 = vunpack.c.l.bf16 %v1954_v8  ;;  %v520_v10 = vunpack.c.h.bf16 %v1954_v8  ;;  %1525 = vmatpush3.bf16.msra.mxu0 %v1954_v8  ;;  %v506_v21 = vadd.f32 %v485_v9, %v365_v13 }
 0x16f   :  { %v1476_v11 = vpop.f32.mrf.mxu0  ;;  %1491 = vmatmul.mubr.msk.bf16.vlgmr.msra.gmra.mxu1 %vm549_vm1, %v1935_v44  ;;  %1536 = vmatprep.subr.bf16.mxu0 %v1757_v0 }
 0x170   :  { %v529_v15 = vsub.f32 %v504_v5, %v519_v12  ;;  %v530_v16 = vsub.f32 %v505_v6, %v520_v10  ;;  %1496 = vmatprep.mubr.msk.bf16.mxu1 %vm1758_vm0, %v1757_v0 }
 0x171   :  { %v488_v17 = vpop.f32.mrf.mxu0  ;;  %1527 = vmatmul.mubr.msk.bf16.vlgmr.msra.gmra.mxu0 %vm549_vm1, %v1935_v44 }
 0x172   :  { %v537_v20 = vpack.c.bf16 %v530_v16, %v529_v15  ;;  %v507_v24 = vadd.f32 %v488_v17, %v368_v14  ;;  %1538 = vmatprep.mubr.msk.bf16.mxu0 %vm1758_vm0, %v1757_v0 }
 0x173   :  { %v1477_v25 = vpop.f32.mrf.mxu0 }
 0x174   :  { %v513_v18 = vpack.c.bf16 %v507_v24, %v506_v21  ;;  %1495 = vmatpush3.bf16.msra.mxu1 %v537_v20 }
 0x175   :  { %v493_v19 = vpop.f32.mrf.mxu0  ;;  %1500 = vmatprep.subr.bf16.mxu1 %v1757_v0 }
 0x176   :  { %v521_v22 = vunpack.c.l.bf16 %v513_v18  ;;  %v522_v23 = vunpack.c.h.bf16 %v513_v18  ;;  %v508_v37 = vadd.f32 %v493_v19, %v373_v29 }
 0x177   :  { %v1480_v28 = vpop.f32.mrf.mxu0  ;;  %1497 = vmatmul.mubr.msk.bf16.vlgmr.msra.gmra.mxu1 %vm549_vm1, %v1935_v44 }
 0x178   :  { %v531_v33 = vsub.f32 %v506_v21, %v521_v22  ;;  %v532_v34 = vsub.f32 %v507_v24, %v522_v23  ;;  %1502 = vmatprep.mubr.msk.bf16.mxu1 %vm1758_vm0, %v1757_v0 }
 0x179   :  { %v496_v35 = vpop.f32.mrf.mxu0 }
 0x17a   :  { %v538_v36 = vpack.c.bf16 %v532_v34, %v531_v33  ;;  %v509_v38 = vadd.f32 %v496_v35, %v376_v32 }
 0x17b   :  { %v1481_v39 = vpop.f32.mrf.mxu0 }
 0x17c   :  { %v514_v40 = vpack.c.bf16 %v509_v38, %v508_v37  ;;  %1501 = vmatpush3.bf16.msra.mxu1 %v538_v36 }
 0x17d   :  { %1506 = vmatprep.subr.bf16.mxu1 %v1757_v0 }
 0x17e   :  { %v523_v41 = vunpack.c.l.bf16 %v514_v40  ;;  %v524_v43 = vunpack.c.h.bf16 %v514_v40  ;;  %1537 = vmatpush3.bf16.msra.mxu0 %v514_v40 }
 0x17f   :  { %1503 = vmatmul.mubr.msk.bf16.vlgmr.msra.gmra.mxu1 %vm549_vm1, %v1935_v44  ;;  %1548 = vmatprep.subr.bf16.mxu0 %v1757_v0 }
 0x180   :  { %v533_v26 = vsub.f32 %v508_v37, %v523_v41  ;;  %v534_v27 = vsub.f32 %v509_v38, %v524_v43  ;;  %1508 = vmatprep.mubr.msk.bf16.mxu1 %vm1758_vm0, %v1757_v0 }
 0x181   :  { %1539 = vmatmul.mubr.msk.bf16.vlgmr.msra.gmra.mxu0 %vm549_vm1, %v1935_v44 }
 0x182   :  { %v539_v30 = vpack.c.bf16 %v534_v27, %v533_v26  ;;  %1549 = vmatpush3.bf16.msra.mxu0 %v1945_v57  ;;  %1550 = vmatprep.mubr.msk.bf16.mxu0 %vm1758_vm0, %v1757_v0 }
 0x183   :  { %1560 = vmatprep.subr.bf16.mxu0 %v1757_v0 }
 0x184   :  { %1507 = vmatpush3.bf16.msra.mxu1 %v539_v30 }
 0x185   :  { %1518 = vmatprep.subr.bf16.mxu1 %v1757_v0 }
 0x187   :  { %1509 = vmatmul.mubr.msk.bf16.vlgmr.msra.gmra.mxu1 %vm549_vm1, %v1935_v44 }
 0x188   :  { %1519 = vmatpush3.bf16.msra.mxu1 %v1945_v57  ;;  %1520 = vmatprep.mubr.msk.bf16.mxu1 %vm1758_vm0, %v1757_v0 }
 0x189   :  { %1551 = vmatmul.mubr.msk.bf16.vlgmr.msra.gmra.mxu0 %vm549_vm1, %v1604_v31  ;;  %1530 = vmatprep.subr.bf16.mxu1 %v1757_v0 }
 0x18a   :  { %1561 = vmatpush3.bf16.msra.mxu0 %v513_v18  ;;  %1562 = vmatprep.mubr.msk.bf16.mxu0 %vm1758_vm0, %v1757_v0 }
 0x18f   :  { %1521 = vmatmul.mubr.msk.bf16.vlgmr.msra.gmra.mxu1 %vm549_vm1, %v1935_v44 }
 0x190   :  { %1531 = vmatpush3.bf16.msra.mxu1 %v513_v18  ;;  %1532 = vmatprep.mubr.msk.bf16.mxu1 %vm1758_vm0, %v1757_v0 }
 0x191   :  { %1542 = vmatprep.subr.bf16.mxu1 %v1757_v0  ;;  %1563 = vmatmul.mubr.msk.bf16.vlgmr.msra.gmra.mxu0 %vm549_vm1, %v1604_v31 }
 0x197   :  { %1533 = vmatmul.mubr.msk.bf16.vlgmr.msra.gmra.mxu1 %vm549_vm1, %v1935_v44 }
 0x198   :  { %1543 = vmatpush3.bf16.msra.mxu1 %v1933_v42  ;;  %1544 = vmatprep.mubr.msk.bf16.mxu1 %vm1758_vm0, %v1757_v0 }
 0x199   :  { %1554 = vmatprep.subr.bf16.mxu1 %v1757_v0 }
 0x19f   :  { %1545 = vmatmul.mubr.msk.bf16.vlgmr.msra.gmra.mxu1 %vm549_vm1, %v1604_v31 }
 0x1a0   :  { %1555 = vmatpush3.bf16.msra.mxu1 %v1954_v8  ;;  %1556 = vmatprep.mubr.msk.bf16.mxu1 %vm1758_vm0, %v1757_v0 }
 0x1a1   :  { %1566 = vmatprep.subr.bf16.mxu1 %v1757_v0 }
 0x1a7   :  { %1557 = vmatmul.mubr.msk.bf16.vlgmr.msra.gmra.mxu1 %vm549_vm1, %v1604_v31 }
 0x1a8   :  { %1567 = vmatpush3.bf16.msra.mxu1 %v514_v40  ;;  %1568 = vmatprep.mubr.msk.bf16.mxu1 %vm1758_vm0, %v1757_v0 }
 0x1af   :  { %1569 = vmatmul.mubr.msk.bf16.vlgmr.msra.gmra.mxu1 %vm549_vm1, %v1604_v31 }
 0x221   :  { %v792_v42 = vpop.f32.mrf.mxu0 }
 0x223   :  { %v1516_v44 = vpop.f32.mrf.mxu0 }
 0x225   :  { %v795_v45 = vpop.f32.mrf.mxu0 }
 0x227   :  { %v587_v46 = vpop.f32.mrf.mxu1  ;;  %v1517_v47 = vpop.f32.mrf.mxu0 }
 0x228   :  { %v793_v48 = vadd.f32 %v792_v42, %v587_v46 }
 0x229   :  { %v1486_v49 = vpop.f32.mrf.mxu1 }
 0x22b   :  { %v590_v50 = vpop.f32.mrf.mxu1 }
 0x22c   :  { %v796_v39 = vadd.f32 %v795_v45, %v590_v50 }
 0x22d   :  { %v1487_v51 = vpop.f32.mrf.mxu1 }
 0x22f   :  { %v628_v52 = vpop.f32.mrf.mxu1 }
 0x231   :  { %v1492_v53 = vpop.f32.mrf.mxu1  ;;  %v874_v54 = vpop.f32.mrf.mxu0 }
 0x233   :  { %v631_v55 = vpop.f32.mrf.mxu1  ;;  %v1528_v56 = vpop.f32.mrf.mxu0 }
 0x235   :  { %v1493_v57 = vpop.f32.mrf.mxu1  ;;  %v877_v58 = vpop.f32.mrf.mxu0 }
 0x237   :  { %v669_v59 = vpop.f32.mrf.mxu1  ;;  %v1529_v0 = vpop.f32.mrf.mxu0 }
 0x238   :  { %v875_v26 = vadd.f32 %v874_v54, %v669_v59 }
 0x239   :  { %v1498_v60 = vpop.f32.mrf.mxu1 }
 0x23b   :  { %v672_v61 = vpop.f32.mrf.mxu1 }
 0x23c   :  { %v878_v49 = vadd.f32 %v877_v58, %v672_v61 }
 0x23d   :  { %v1499_v62 = vpop.f32.mrf.mxu1 }
 0x23f   :  { %v710_v63 = vpop.f32.mrf.mxu1 }
 0x241   :  { %v1504_v1 = vpop.f32.mrf.mxu1  ;;  %v2025_v2 = vpop.f32.mrf.mxu0 }
 0x243   :  { %v713_v3 = vpop.f32.mrf.mxu1  ;;  %v1540_v4 = vpop.f32.mrf.mxu0 }
 0x245   :  { %v1505_v5 = vpop.f32.mrf.mxu1  ;;  %v2027_v6 = vpop.f32.mrf.mxu0 }
 0x247   :  { %v2029_v7 = vpop.f32.mrf.mxu1  ;;  %v1541_v8 = vpop.f32.mrf.mxu0 }
 0x249   :  { %v1510_v9 = vpop.f32.mrf.mxu1  ;;  %v1046_v12 = vpop.f32.mrf.mxu0 }
 0x24b   :  { %v2031_v10 = vpop.f32.mrf.mxu1  ;;  %v1552_v11 = vpop.f32.mrf.mxu0 }
 0x24d   :  { %v1511_v13 = vpop.f32.mrf.mxu1  ;;  %v1049_v14 = vpop.f32.mrf.mxu0 }
 0x24e   :  { %v957_v13 = vadd.f32 %v2025_v2, %v2029_v7 }
 0x24f   :  { %v833_v15 = vpop.f32.mrf.mxu1  ;;  %v1553_v16 = vpop.f32.mrf.mxu0 }
 0x250   :  { %v834_v33 = vadd.f32 %v833_v15, %v628_v52 }
 0x251   :  { %v1522_v17 = vpop.f32.mrf.mxu1  ;;  %v1128_v20 = vpop.f32.mrf.mxu0 }
 0x252   :  { %v1178_v40 = vadd.f32 %v1046_v12, %v834_v33 }
 0x253   :  { %v836_v21 = vpop.f32.mrf.mxu1  ;;  %v1564_v24 = vpop.f32.mrf.mxu0 }
 0x254   :  { %v837_v37 = vadd.f32 %v836_v21, %v631_v55  ;;  %v1188_v46 = vmul.f32 %v1178_v40, %v1178_v40 }
 0x255   :  { %v1523_v25 = vpop.f32.mrf.mxu1  ;;  %v1131_v18 = vpop.f32.mrf.mxu0 }
 0x256   :  { %v1179_v42 = vadd.f32 %v1049_v14, %v837_v37  ;;  %v960_v14 = vadd.f32 %v2027_v6, %v2031_v10 }
 0x257   :  { %v915_v19 = vpop.f32.mrf.mxu1  ;;  %v1565_v22 = vpop.f32.mrf.mxu0 }
 0x258   :  { %v916_v35 = vadd.f32 %v915_v19, %v710_v63  ;;  %v1189_v57 = vmul.f32 %v1179_v42, %v1179_v42 }
 0x259   :  { %v1534_v23 = vpop.f32.mrf.mxu1 }
 0x25a   :  { %v1182_v27 = vadd.f32 %v1128_v20, %v916_v35 }
 0x25b   :  { %v918_v28 = vpop.f32.mrf.mxu1 }
 0x25c   :  { %v919_v41 = vadd.f32 %v918_v28, %v713_v3  ;;  %v1194_v53 = vsub.f32 %v1182_v27, %v1188_v46 }
 0x25d   :  { %v1535_v29 = vpop.f32.mrf.mxu1 }
 0x25e   :  { %v1183_v51 = vadd.f32 %v1131_v18, %v919_v41 }
 0x25f   :  { %v1005_v32 = vpop.f32.mrf.mxu1 }
 0x260   :  { %v1176_v36 = vadd.f32 %v1005_v32, %v793_v48  ;;  %v1195_v60 = vsub.f32 %v1183_v51, %v1189_v57 }
 0x261   :  { %v1546_v34 = vpop.f32.mrf.mxu1 }
 0x262   :  { %v1186_v30 = vmul.f32 %v1176_v36, %v1176_v36  ;;  %v1190_v17 = vmul.f32 %v1178_v40, %v1176_v36 }
 0x263   :  { %v1008_v38 = vpop.f32.mrf.mxu1 }
 0x264   :  { %v1177_v31 = vadd.f32 %v1008_v38, %v796_v39  ;;  %v1208_v56 = vadd.f32 %v1188_v46, %v1186_v30  ;;  %v1198_v23 = vmul.f32 2.0, %v1190_v17 }
 0x265   :  { %v1547_v43 = vpop.f32.mrf.mxu1 }
 0x266   :  { %v1187_v48 = vmul.f32 %v1177_v31, %v1177_v31  ;;  %v1210_v59 = vadd.f32 0.0001, %v1208_v56  ;;  %v1191_v20 = vmul.f32 %v1179_v42, %v1177_v31  ;;  %v1200_v34 = vadd.f32 0.0001, %v1198_v23 }
 0x267   :  { %v1087_v44 = vpop.f32.mrf.mxu1 }
 0x268   :  { %v1180_v47 = vadd.f32 %v1087_v44, %v875_v26  ;;  %v1209_v62 = vadd.f32 %v1189_v57, %v1187_v48  ;;  %v1199_v28 = vmul.f32 2.0, %v1191_v20 }
 0x269   :  { %v1558_v52 = vpop.f32.mrf.mxu1 }
 0x26a   :  { %v1192_v55 = vsub.f32 %v1180_v47, %v1186_v30  ;;  %v1211_v61 = vadd.f32 0.0001, %v1209_v62  ;;  %v1201_v6 = vadd.f32 0.0001, %v1199_v28 }
 0x26b   :  { %v1090_v45 = vpop.f32.mrf.mxu1 }
 0x26c   :  { %v1212_v50 = vadd.f32 %v1194_v53, %v1192_v55  ;;  %v1181_v0 = vadd.f32 %v1090_v45, %v878_v49 }
 0x26d   :  { %v1559_v54 = vpop.f32.mrf.mxu1 }
 0x26e   :  { %v1214_v63 = vadd.f32 0.0009, %v1212_v50  ;;  %v1193_v1 = vsub.f32 %v1181_v0, %v1187_v48 }
 0x26f   :  { %v1169_v3 = vpop.f32.mrf.mxu1 }
 0x270   :  { %v1216_v4 = vmul.f32 %v1214_v63, %v1210_v59  ;;  %v1213_v5 = vadd.f32 %v1195_v60, %v1193_v1  ;;  %v1184_v15 = vadd.f32 %v1169_v3, %v957_v13 }
 0x271   :  { %v1570_v58 = vpop.f32.mrf.mxu1 }
 0x272   :  { %1605 = vrcp.f32 %v1216_v4  ;;  %v1215_v8 = vadd.f32 0.0009, %v1213_v5  ;;  %v1196_v21 = vsub.f32 %v1184_v15, %v1190_v17 }
 0x273   :  { %v1172_v9 = vpop.f32.mrf.mxu1 }
 0x274   :  { %v1217_v12 = vmul.f32 %v1215_v8, %v1211_v61  ;;  %v1185_v16 = vadd.f32 %v1172_v9, %v960_v14  ;;  %v1202_v18 = vmul.f32 2.0, %v1196_v21 }
 0x275   :  { %v1571_v11 = vpop.f32.mrf.mxu1 }
 0x276   :  { %1607 = vrcp.f32 %v1217_v12  ;;  %v1197_v24 = vsub.f32 %v1185_v16, %v1191_v20  ;;  %v1204_v33 = vadd.f32 0.0009, %v1202_v18 }
 0x278   :  { %v1203_v19 = vmul.f32 2.0, %v1197_v24  ;;  %v1206_v37 = vmul.f32 %v1204_v33, %v1200_v34 }
 0x27a   :  { %v1205_v2 = vadd.f32 0.0009, %v1203_v19 }
 0x27c   :  { %v1207_v36 = vmul.f32 %v1205_v2, %v1201_v6 }
 0x27f   :  { %v1606_v25 = vpop.eup %1605 }
 0x280   :  { %v1220_v22 = vmul.f32 %v1606_v25, %v1216_v4 }
 0x282   :  { %v1222_v29 = vsub.f32 2.0, %v1220_v22 }
 0x283   :  { %v1608_v32 = vpop.eup %1607 }
 0x284   :  { %v1221_v7 = vmul.f32 %v1608_v32, %v1217_v12  ;;  %v1224_v35 = vmul.f32 %v1606_v25, %v1222_v29 }
 0x286   :  { %v1223_v10 = vsub.f32 2.0, %v1221_v7  ;;  %v1228_v39 = vmul.f32 %v1224_v35, %v1206_v37 }
 0x288   :  { %v1225_v38 = vmul.f32 %v1608_v32, %v1223_v10 }
 0x28a   :  { %v1229_v40 = vmul.f32 %v1225_v38, %v1207_v36 }
 0x28c   :  { %v1241_v41 = vadd.f32 %v1229_v40, %v1228_v39 }
 0x28e   :  { %1242 = vadd.xlane.f32.xlu0 %v1241_v41 }
 0x317   :  { %v1243_v43 = vpop.xlane.xlu0 %1242 }
 0x318   :  { %v1244_v26 = vrot.slane %v1243_v43, 4 }
 0x31a   :  { %v1245_v27 = vadd.f32 %v1244_v26, %v1243_v43 }
 0x31c   :  { %v1246_v30 = vrot.slane %v1245_v27, 2 }
 0x31e   :  { %v1247_v31 = vadd.f32 %v1246_v30, %v1245_v27 }
 0x320   :  { %v1248_v42 = vrot.slane %v1247_v31, 1 }
 0x322   :  { %v1249_v44 = vadd.f32 %v1248_v42, %v1247_v31 }
 0x324   :  { %1572 = vpush %v1249_v44 }
 0x355   :  { %s1573_s4 = spop %1572 }
 0x356   :  { %s1251_s5 = smul.f32 0.00048828125, %s1573_s4 }
 0x358   :  { %s1252_s27 = ssub.f32 1.0, %s1251_s5 }
 0x35a   :  { %1254 = sst [smem:[#allocation14]] %s1252_s27 }
 0x35b   :  { %1262 = dma.smem_to_hbm %s1759_s28, 16, %s2046_s6, [#allocation5]  }
 0x35c   :  { %1745 = dma.done.wait [#allocation5], 16  }
 0x35d   :  { %1746 = vsyncadd [#allocation5], 4294967280 }
 0x35e   :  { %1266 = sfence }
 0x35f   :  { %1267 = vsyncpa [#allocation4], 1 }
 0x360   :  { %1268 = vsyncpa [#allocation7], 1 }
 0x361   :  { %1269 = vsyncpa [#allocation10], 1 }
 0x362   :  { %1270 = vsyncpa [#allocation13], 1 }
 0x363   :  { %1271 = vsyncpa [#allocation5], 1 }

</bundles_post_ra>
